<compile_context>
chip_gen: v6e
topology: v6e:2x2x1
jax: 0.10.0
libtpu: 0.0.40
codegen_flags: <defaults>
</compile_context>

<pallas_src>
import jax
import jax.numpy as jnp
from jax.experimental import pallas as pl
from jax.experimental.pallas import tpu as pltpu


def _round_up(v: int, m: int) -> int:
    return (v + m - 1) // m * m


def _vmem_limit_bytes(bp: int, ip: int, hp: int):
    kp = ip + hp
    need = (
        kp * 4 * hp * 2        # resident bf16 fused weight
        + 4 * hp * 4           # resident f32 fused bias
        + bp * hp * 4          # resident h0 block
        + 2 * bp * ip * 4      # double-buffered x_t blocks
        + 2 * bp * hp * 4      # double-buffered output blocks
        + bp * kp * 2          # xh staging scratch (bf16)
        + bp * hp * 4          # carried hidden-state scratch (f32)
    )
    need = int(need * 1.25) + (1 << 20)       # headroom for compiler temps
    if need <= 32 * 1024 * 1024:
        return None                           # default scoped limit suffices
    # Large H: raise scoped limit (v5e/v6e have 128 MiB physical VMEM).
    # v7x (64 MiB physical) would additionally want N-tiling of the fused
    # weight for very large hidden sizes.
    return min(need, 100 * 1024 * 1024)


def _gru_seq_kernel(h0_ref, x_ref, w_ref, b_ref, y_ref, xh_scr, h_scr):
    """One GRU step per grid iteration; hidden state carried in VMEM scratch."""
    ip = x_ref.shape[-1]
    hp = h_scr.shape[-1]
    t = pl.program_id(0)

    @pl.when(t == 0)
    def _init():
        h_scr[...] = h0_ref[...]

    h = h_scr[...]                                        # (Bp, Hp) f32

    # Assemble xh = [x_t | h] in bf16 for a single fused MXU pass.
    xh_scr[:, :ip] = x_ref[0].astype(xh_scr.dtype)
    xh_scr[:, ip:ip + hp] = h.astype(xh_scr.dtype)

    # (Bp, Kp) @ (Kp, 4*Hp) -> (Bp, 4*Hp); f32 accumulate; folded biases.
    gates = jnp.dot(xh_scr[...], w_ref[...],
                    preferred_element_type=jnp.float32) + b_ref[...]

    rz = jax.nn.sigmoid(gates[:, :2 * hp])                # r and z in one pass
    r = rz[:, :hp]
    z = rz[:, hp:2 * hp]
    n = jnp.tanh(gates[:, 2 * hp:3 * hp] + r * gates[:, 3 * hp:4 * hp])

    h_new = (1.0 - z) * n + z * h
    h_scr[...] = h_new
    y_ref[0] = h_new.astype(y_ref.dtype)


def gru_sequence_pallas(xs, h0, w_pack, b_pack, *, input_size, state_size,
                        i_pad, h_pad):
    """Run the GRU over a sequence.  xs: (T, B, I), h0: (B, H).
    Returns per-step hidden states ys: (T, B, H) in float32."""
    T, B, I = xs.shape
    H = h0.shape[-1]
    assert I == input_size and H == state_size
    Ip, Hp = i_pad, h_pad
    Kp = Ip + Hp
    Bp = _round_up(max(B, 1), 16)

    xs_p = jnp.zeros((T, Bp, Ip), jnp.float32).at[:, :B, :I].set(
        xs.astype(jnp.float32))
    h0_p = jnp.zeros((Bp, Hp), jnp.float32).at[:B, :H].set(
        h0.astype(jnp.float32))

    ys_p = pl.pallas_call(
        _gru_seq_kernel,
        out_shape=jax.ShapeDtypeStruct((T, Bp, Hp), jnp.float32),
        grid=(T,),
        in_specs=[
            pl.BlockSpec((Bp, Hp), lambda t: (0, 0)),        # h0: VMEM resident
            pl.BlockSpec((1, Bp, Ip), lambda t: (t, 0, 0)),  # x_t: streamed
            pl.BlockSpec((Kp, 4 * Hp), lambda t: (0, 0)),    # W:  VMEM resident
            pl.BlockSpec((1, 4 * Hp), lambda t: (0, 0)),     # b:  VMEM resident
        ],
        out_specs=pl.BlockSpec((1, Bp, Hp), lambda t: (t, 0, 0)),
        scratch_shapes=[
            pltpu.VMEM((Bp, Kp), jnp.bfloat16),   # xh staging for fused matmul
            pltpu.VMEM((Bp, Hp), jnp.float32),    # carried hidden state
        ],
        compiler_params=pltpu.CompilerParams(
            dimension_semantics=("arbitrary",),   # recurrence is sequential
            vmem_limit_bytes=_vmem_limit_bytes(Bp, Ip, Hp),
        ),
    )(h0_p, xs_p, w_pack, b_pack)

    return ys_p[:, :B, :H]


class SingleGRUPallas:
    """JAX/Pallas equivalent of the PyTorch SingleGRU module (nn.GRUCell)."""

    def __init__(self, input_size: int, state_size: int, key):
        self.input_size = int(input_size)
        self.state_size = int(state_size)
        I, H = self.input_size, self.state_size
        k1, k2, k3, k4 = jax.random.split(key, 4)
        bound = 1.0 / float(H) ** 0.5
        # Raw parameters in PyTorch layout (f32, kept for reference checks).
        self.weight_ih = jax.random.uniform(
            k1, (3 * H, I), jnp.float32, -bound, bound)
        self.weight_hh = jax.random.uniform(
            k2, (3 * H, H), jnp.float32, -bound, bound)
        self.bias_ih = jax.random.uniform(
            k3, (3 * H,), jnp.float32, -bound, bound)
        self.bias_hh = jax.random.uniform(
            k4, (3 * H,), jnp.float32, -bound, bound)

        # Lane-aligned padded sizes: each gate starts on a 128-lane boundary.
        self.i_pad = _round_up(max(I, 1), 128)
        self.h_pad = _round_up(max(H, 1), 128)
        # Pre-transpose / pack / bias-fold ONCE (never re-done per call).
        self.w_pack, self.b_pack = self._pack_params()

    def _pack_params(self):
        I, H = self.input_size, self.state_size
        Ip, Hp = self.i_pad, self.h_pad
        Kp = Ip + Hp
        wih_t = self.weight_ih.T          # (I, 3H): columns [r | z | n]
        whh_t = self.weight_hh.T          # (H, 3H)

        w = jnp.zeros((Kp, 4 * Hp), jnp.float32)
        # r gate (input + hidden fused into one column block)
        w = w.at[:I, 0:H].set(wih_t[:, 0:H])
        w = w.at[Ip:Ip + H, 0:H].set(whh_t[:, 0:H])
        # z gate (fused)
        w = w.at[:I, Hp:Hp + H].set(wih_t[:, H:2 * H])
        w = w.at[Ip:Ip + H, Hp:Hp + H].set(whh_t[:, H:2 * H])
        # n gate: input and hidden parts kept in separate column blocks so the
        # kernel can apply r to the hidden contribution only (PyTorch variant).
        w = w.at[:I, 2 * Hp:2 * Hp + H].set(wih_t[:, 2 * H:3 * H])
        w = w.at[Ip:Ip + H, 3 * Hp:3 * Hp + H].set(whh_t[:, 2 * H:3 * H])

        b = jnp.zeros((1, 4 * Hp), jnp.float32)
        b = b.at[0, 0:H].set(self.bias_ih[0:H] + self.bias_hh[0:H])
        b = b.at[0, Hp:Hp + H].set(self.bias_ih[H:2 * H] + self.bias_hh[H:2 * H])
        b = b.at[0, 2 * Hp:2 * Hp + H].set(self.bias_ih[2 * H:3 * H])
        b = b.at[0, 3 * Hp:3 * Hp + H].set(self.bias_hh[2 * H:3 * H])
        return w.astype(jnp.bfloat16), b

    def init_memory(self, batch_shape=()):
        return jnp.zeros((*batch_shape, self.state_size), jnp.float32)

    def __call__(self, x, s):
        """Single GRUCell step: x (B, I), s (B, H) -> (h', h')."""
        ys = gru_sequence_pallas(
            x[None], s, self.w_pack, self.b_pack,
            input_size=self.input_size, state_size=self.state_size,
            i_pad=self.i_pad, h_pad=self.h_pad)
        out = ys[0].astype(s.dtype)
        return out, out

    def unroll(self, xs, s0):
        """Fused multi-step rollout: xs (T, B, I), s0 (B, H) -> (ys, h_T).
        Weights stay VMEM-resident across all T steps (single pallas_call)."""
        ys = gru_sequence_pallas(
            xs, s0, self.w_pack, self.b_pack,
            input_size=self.input_size, state_size=self.state_size,
            i_pad=self.i_pad, h_pad=self.h_pad).astype(s0.dtype)
        return ys, ys[-1]


def _gru_reference_step(x, h, weight_ih, weight_hh, bias_ih, bias_hh):
    H = h.shape[-1]
    gi = x @ weight_ih.T + bias_ih
    gh = h @ weight_hh.T + bias_hh
    i_r, i_z, i_n = gi[:, :H], gi[:, H:2 * H], gi[:, 2 * H:]
    h_r, h_z, h_n = gh[:, :H], gh[:, H:2 * H], gh[:, 2 * H:]
    r = jax.nn.sigmoid(i_r + h_r)
    z = jax.nn.sigmoid(i_z + h_z)
    n = jnp.tanh(i_n + r * h_n)
    return (1.0 - z) * n + z * h


if __name__ == "__main__":
    key = jax.random.PRNGKey(0)
    k_mod, k_x, k_s, k_seq = jax.random.split(key, 4)

    batch, input_size, state_size, seq_len = 8, 16, 32, 8
    module = SingleGRUPallas(input_size, state_size, k_mod)

    # ---- single step (matches SingleGRU.forward semantics) ----
    x = jax.random.normal(k_x, (batch, input_size), jnp.float32)
    s = jax.random.normal(k_s, (batch, state_size), jnp.float32)
    out, new_state = module(x, s)
    out = jax.block_until_ready(out)

    ref = _gru_reference_step(x, s, module.weight_ih, module.weight_hh,
                              module.bias_ih, module.bias_hh)
    assert out.shape == (batch, state_size)
    assert bool(jnp.all(out == new_state))
    # bf16 matmul operands (f32 accumulate / gate math) -> loosened tolerance.
    assert bool(jnp.allclose(out, ref, atol=5e-2, rtol=5e-2)), (
        float(jnp.max(jnp.abs(out - ref))))

    # ---- fused multi-step rollout (weights resident across all T steps) ----
    xs = jax.random.normal(k_seq, (seq_len, batch, input_size), jnp.float32)
    s0 = module.init_memory((batch,))
    ys, h_t = module.unroll(xs, s0)
    ys = jax.block_until_ready(ys)

    def scan_step(h, x_t):
        h_new = _gru_reference_step(x_t, h, module.weight_ih, module.weight_hh,
                                    module.bias_ih, module.bias_hh)
        return h_new, h_new

    h_ref, ys_ref = jax.lax.scan(scan_step, s0, xs)
    assert ys.shape == (seq_len, batch, state_size)
    assert bool(jnp.allclose(ys, ys_ref, atol=5e-2, rtol=5e-2)), (
        float(jnp.max(jnp.abs(ys - ys_ref))))
    assert bool(jnp.allclose(h_t, h_ref, atol=5e-2, rtol=5e-2))

    print("KERNEL_OK")
</pallas_src>

<mosaic_0001>
module attributes {stable_mosaic.version = 11 : i64} {
  func.func @_gru_seq_kernel(%arg0: i32, %arg1: memref<16x128xf32, #tpu.memory_space<vmem>>, %arg2: memref<1x16x128xf32, #tpu.memory_space<vmem>>, %arg3: memref<256x512xbf16, #tpu.memory_space<vmem>>, %arg4: memref<1x512xf32, #tpu.memory_space<vmem>>, %arg5: memref<1x16x128xf32, #tpu.memory_space<vmem>>, %arg6: memref<16x256xbf16, #tpu.memory_space<vmem>>, %arg7: memref<16x128xf32, #tpu.memory_space<vmem>>) attributes {dimension_semantics = [#tpu.dimension_semantics<arbitrary>], iteration_bounds = array<i64: 1>, scalar_prefetch = 0 : i64, scratch_operands = 2 : i64, tpu.core_type = #tpu.core_type<tc>, window_params = [{pipeline_mode = #tpu.pipeline_mode<synchronous>, transform_indices = @transform_0, window_bounds = array<i64: 16, 128>}, {transform_indices = @transform_1, window_bounds = array<i64: 1, 16, 128>}, {pipeline_mode = #tpu.pipeline_mode<synchronous>, transform_indices = @transform_2, window_bounds = array<i64: 256, 512>}, {pipeline_mode = #tpu.pipeline_mode<synchronous>, transform_indices = @transform_3, window_bounds = array<i64: 1, 512>}, {transform_indices = @transform_4, window_bounds = array<i64: 1, 16, 128>}]} {
    %c0_i32 = arith.constant 0 : i32
    %0 = arith.cmpi eq, %arg0, %c0_i32 : i32
    %1 = arith.extui %0 : i1 to i32
    %c0_i32_0 = arith.constant 0 : i32
    %2 = arith.cmpi ne, %1, %c0_i32_0 : i32
    scf.if %2 {
      %c0_21 = arith.constant 0 : index
      %c0_22 = arith.constant 0 : index
      %38 = vector.load %arg1[%c0_21, %c0_22] : memref<16x128xf32, #tpu.memory_space<vmem>>, vector<16x128xf32>
      %c0_23 = arith.constant 0 : index
      %c0_24 = arith.constant 0 : index
      %39 = vector.load %arg7[%c0_23, %c0_24] : memref<16x128xf32, #tpu.memory_space<vmem>>, vector<16x128xf32>
      tpu.vector_store %arg7[%c0_23, %c0_24], %38 {strides = array<i32>} : memref<16x128xf32, #tpu.memory_space<vmem>>, vector<16x128xf32>,
    } else {
    }
    %c0 = arith.constant 0 : index
    %c0_1 = arith.constant 0 : index
    %3 = vector.load %arg7[%c0, %c0_1] : memref<16x128xf32, #tpu.memory_space<vmem>>, vector<16x128xf32>
    %c0_2 = arith.constant 0 : index
    %c0_3 = arith.constant 0 : index
    %c0_4 = arith.constant 0 : index
    %4 = vector.load %arg2[%c0_2, %c0_3, %c0_4] : memref<1x16x128xf32, #tpu.memory_space<vmem>>, vector<1x16x128xf32>
    %5 = vector.shape_cast %4 : vector<1x16x128xf32> to vector<16x128xf32>
    %6 = arith.truncf %5 : vector<16x128xf32> to vector<16x128xbf16>
    %c0_5 = arith.constant 0 : index
    %c0_6 = arith.constant 0 : index
    %7 = vector.load %arg6[%c0_5, %c0_6] : memref<16x256xbf16, #tpu.memory_space<vmem>>, vector<16x128xbf16>
    tpu.vector_store %arg6[%c0_5, %c0_6], %6 {strides = array<i32>} : memref<16x256xbf16, #tpu.memory_space<vmem>>, vector<16x128xbf16>,
    %8 = arith.truncf %3 : vector<16x128xf32> to vector<16x128xbf16>
    %c0_7 = arith.constant 0 : index
    %c128 = arith.constant 128 : index
    %9 = vector.load %arg6[%c0_7, %c128] : memref<16x256xbf16, #tpu.memory_space<vmem>>, vector<16x128xbf16>
    tpu.vector_store %arg6[%c0_7, %c128], %8 {strides = array<i32>} : memref<16x256xbf16, #tpu.memory_space<vmem>>, vector<16x128xbf16>,
    %c0_8 = arith.constant 0 : index
    %c0_9 = arith.constant 0 : index
    %10 = vector.load %arg6[%c0_8, %c0_9] : memref<16x256xbf16, #tpu.memory_space<vmem>>, vector<16x256xbf16>
    %c0_10 = arith.constant 0 : index
    %c0_11 = arith.constant 0 : index
    %11 = vector.load %arg3[%c0_10, %c0_11] : memref<256x512xbf16, #tpu.memory_space<vmem>>, vector<256x512xbf16>
    %cst = arith.constant dense<0.000000e+00> : vector<16x512xf32>
    %12 = tpu.matmul %10, %11, %cst {dimension_numbers = #tpu.dot_dimension_numbers<[1], [0], [0], [1], [0, 0, 1, 1], [], []>} : vector<16x256xbf16>, vector<256x512xbf16>, vector<16x512xf32> -> vector<16x512xf32>
    %c0_12 = arith.constant 0 : index
    %c0_13 = arith.constant 0 : index
    %13 = vector.load %arg4[%c0_12, %c0_13] : memref<1x512xf32, #tpu.memory_space<vmem>>, vector<1x512xf32>
    %14 = vector.broadcast %13 : vector<1x512xf32> to vector<16x512xf32>
    %15 = arith.addf %12, %14 : vector<16x512xf32>
    %16 = vector.extract_strided_slice %15 {offsets = [0, 0], sizes = [16, 256], strides = [1, 1]} : vector<16x512xf32> to vector<16x256xf32>
    %17 = arith.negf %16 : vector<16x256xf32>
    %18 = math.exp %17 : vector<16x256xf32>
    %cst_14 = arith.constant 1.000000e+00 : f32
    %19 = vector.broadcast %cst_14 : f32 to vector<16x256xf32>
    %20 = arith.addf %19, %18 : vector<16x256xf32>
    %21 = arith.divf %19, %20 : vector<16x256xf32>
    %22 = vector.extract_strided_slice %21 {offsets = [0, 0], sizes = [16, 128], strides = [1, 1]} : vector<16x256xf32> to vector<16x128xf32>
    %23 = vector.extract_strided_slice %21 {offsets = [0, 128], sizes = [16, 128], strides = [1, 1]} : vector<16x256xf32> to vector<16x128xf32>
    %24 = vector.extract_strided_slice %15 {offsets = [0, 256], sizes = [16, 128], strides = [1, 1]} : vector<16x512xf32> to vector<16x128xf32>
    %25 = vector.extract_strided_slice %15 {offsets = [0, 384], sizes = [16, 128], strides = [1, 1]} : vector<16x512xf32> to vector<16x128xf32>
    %26 = arith.mulf %22, %25 : vector<16x128xf32>
    %27 = arith.addf %24, %26 : vector<16x128xf32>
    %28 = math.tanh %27 : vector<16x128xf32>
    %cst_15 = arith.constant 1.000000e+00 : f32
    %29 = vector.broadcast %cst_15 : f32 to vector<16x128xf32>
    %30 = arith.subf %29, %23 : vector<16x128xf32>
    %31 = arith.mulf %30, %28 : vector<16x128xf32>
    %32 = arith.mulf %23, %3 : vector<16x128xf32>
    %33 = arith.addf %31, %32 : vector<16x128xf32>
    %c0_16 = arith.constant 0 : index
    %c0_17 = arith.constant 0 : index
    %34 = vector.load %arg7[%c0_16, %c0_17] : memref<16x128xf32, #tpu.memory_space<vmem>>, vector<16x128xf32>
    tpu.vector_store %arg7[%c0_16, %c0_17], %33 {strides = array<i32>} : memref<16x128xf32, #tpu.memory_space<vmem>>, vector<16x128xf32>,
    %c0_18 = arith.constant 0 : index
    %c0_19 = arith.constant 0 : index
    %c0_20 = arith.constant 0 : index
    %35 = vector.load %arg5[%c0_18, %c0_19, %c0_20] : memref<1x16x128xf32, #tpu.memory_space<vmem>>, vector<1x16x128xf32>
    %36 = vector.shape_cast %35 : vector<1x16x128xf32> to vector<16x128xf32>
    %37 = vector.shape_cast %33 : vector<16x128xf32> to vector<1x16x128xf32>
    tpu.vector_store %arg5[%c0_18, %c0_19, %c0_20], %37 {strides = array<i32>} : memref<1x16x128xf32, #tpu.memory_space<vmem>>, vector<1x16x128xf32>,
    return
  }
  func.func @transform_0(%arg0: i32) -> (i32, i32) {
    %c0_i32 = arith.constant 0 : i32
    %c0_i32_0 = arith.constant 0 : i32
    %c0_i32_1 = arith.constant 0 : i32
    return %c0_i32, %c0_i32_0 : i32, i32
  }
  func.func @transform_1(%arg0: i32) -> (i32, i32, i32) {
    %c0_i32 = arith.constant 0 : i32
    %c0_i32_0 = arith.constant 0 : i32
    %c0_i32_1 = arith.constant 0 : i32
    return %arg0, %c0_i32, %c0_i32_0 : i32, i32, i32
  }
  func.func @transform_2(%arg0: i32) -> (i32, i32) {
    %c0_i32 = arith.constant 0 : i32
    %c0_i32_0 = arith.constant 0 : i32
    %c0_i32_1 = arith.constant 0 : i32
    return %c0_i32, %c0_i32_0 : i32, i32
  }
  func.func @transform_3(%arg0: i32) -> (i32, i32) {
    %c0_i32 = arith.constant 0 : i32
    %c0_i32_0 = arith.constant 0 : i32
    %c0_i32_1 = arith.constant 0 : i32
    return %c0_i32, %c0_i32_0 : i32, i32
  }
  func.func @transform_4(%arg0: i32) -> (i32, i32, i32) {
    %c0_i32 = arith.constant 0 : i32
    %c0_i32_0 = arith.constant 0 : i32
    %c0_i32_1 = arith.constant 0 : i32
    return %arg0, %c0_i32, %c0_i32_0 : i32, i32, i32
  }
}

</mosaic_0001>

<bundles_post_ra>
// kernel: tpu_custom_call.1
= control target key start
LH: loop header
LB: loop body
LE: loop exit
PB: predicated region body
PF: predicated region fallthrough
CT: control target
= control target key end

     0   :  { %9 = vsyncpa [#allocation5], 0  ;;  %s1021_s0 = inlined_call_operand.hbm [shape: f32[16,128], index: 0, kind: input, shape index: {}]   ;;  %s1022_s1 = inlined_call_operand.hbm [shape: f32[1,16,128], index: 1, kind: input, shape index: {}]   ;;  %s1023_s2 = inlined_call_operand.hbm [shape: bf16[256,512], index: 2, kind: input, shape index: {}]   ;;  %s1024_s3 = inlined_call_operand.vmem [shape: f32[1,512], index: 3, kind: input, shape index: {}]   ;;  %s1025_s4 = inlined_call_operand.hbm [shape: f32[1,16,128], index: 4, kind: output, shape index: {}]  }
   0x1   :  { %10 = vsyncpa [#allocation8], 0 }
   0x2   :  { %11 = vsyncpa [#allocation6], 0  ;;  %s956_s15 = smov [#allocation7]   ;;  %s957_s17 = smov [#allocation4]  }
   0x3   :  { %s29_s16 = sshll.u32 %s956_s15, 4  ;;  %s17_s18 = sshll.u32 %s957_s17, 4  ;;  %s30_s16 = int_to_ptr.vmem [resolvable:$true] %s29_s16  ;;  %s18_s18 = int_to_ptr.vmem [resolvable:$true] %s17_s18 }
   0x4   :  { %s878_s19 = scalar_lea.vmem %s30_s16, 256  ;;  %p883_p1 = scmp.lt.s32.totalorder %s30_s16, %s30_s16 }
   0x5   :  { %p879_p0 = scmp.ne.s32.totalorder %s30_s16, %s878_s19  ;;  %p884_p2 = scmp.lt.s32.totalorder %s878_s19, %s878_s19 }
   0x7   :  { %p885_p3 = por %p884_p2, %p883_p1 }
   0x9   :  { %p886_p4 = pnand %p885_p3, %p879_p0 }
   0xb   :  { %889 = shalt.err (!%p886_p4)
}
   0xc   :  { %s958_s20 = smov 128   ;;  %s959_s21 = smov 8  }
   0xd   :  { %35 = dma.hbm_to_vmem [thread:$0]  %s1022_s1, 256, %s30_s16, [#allocation8], %s958_s20, %s958_s20, %s959_s21  }
   0xe   :  { %s898_s24 = scalar_lea.vmem %s18_s18, 256  ;;  %p903_p6 = scmp.lt.s32.totalorder %s18_s18, %s18_s18 }
   0xf   :  { %p899_p5 = scmp.ne.s32.totalorder %s18_s18, %s898_s24  ;;  %p904_p7 = scmp.lt.s32.totalorder %s898_s24, %s898_s24 }
  0x11   :  { %p905_p8 = por %p904_p7, %p903_p6 }
  0x13   :  { %p906_p9 = pnand %p905_p8, %p899_p5 }
  0x15   :  { %909 = shalt.err (!%p906_p9)
}
  0x16   :  { %23 = dma.hbm_to_vmem [thread:$0]  %s1021_s0, 256, %s18_s18, [#allocation5], %s958_s20, %s958_s20, %s959_s21  }
  0x17   :  { %s960_s27 = smov [#allocation9]  }
  0x18   :  { %s41_s28 = sshll.u32 %s960_s27, 4  ;;  %s42_s28 = int_to_ptr.vmem [resolvable:$true] %s41_s28 }
  0x19   :  { %s918_s29 = scalar_lea.vmem %s42_s28, 8192  ;;  %p923_p11 = scmp.lt.s32.totalorder %s42_s28, %s42_s28 }
  0x1a   :  { %p919_p10 = scmp.ne.s32.totalorder %s42_s28, %s918_s29  ;;  %p924_p12 = scmp.lt.s32.totalorder %s918_s29, %s918_s29 }
  0x1c   :  { %p925_p13 = por %p924_p12, %p923_p11 }
  0x1e   :  { %p926_p0 = pnand %p925_p13, %p919_p10 }
  0x20   :  { %929 = shalt.err (!%p926_p0)
}
  0x21   :  { %s961_s1 = smov 256   ;;  %s962_s30 = smov 16  }
  0x22   :  { %47 = dma.hbm_to_vmem [thread:$0]  %s1023_s2, 8192, %s42_s28, [#allocation8], %s961_s1, %s961_s1, %s962_s30  }
  0x23   :  { %950 = dma.done.wait [#allocation5], 256  }
  0x24   :  { %951 = vsyncadd [#allocation5], 4294967040 }
  0x25   :  { %952 = dma.done.wait [#allocation8], 8448  }
  0x26   :  { %953 = vsyncadd [#allocation8], 4294958848  ;;  %v754_v0 = vld [vmem:[#allocation9 + $0xe4] ss:$16 sps:$4 sm:$0xff]   ;;  %v756_v1 = vld [vmem:[#allocation9 + $0xe0] ss:$16 sps:$4 sm:$0xff]  }
  0x27   :  { %509 = vmatprep.subr.bf16.mxu0 %v754_v0  ;;  %v757_v2 = vld [vmem:[#allocation9 + $0xc4] ss:$16 sps:$4 sm:$0xff]   ;;  %v759_v3 = vld [vmem:[#allocation9 + $0xc0] ss:$16 sps:$4 sm:$0xff]   ;;  %v774_v7 = vld [vmem:[#allocation9 + $0xec] ss:$16 sps:$4 sm:$0xff]  }
  0x28   :  { %510 = vmatpush1.bf16.msra.mxu0 %v756_v1  ;;  %v760_v4 = vld [vmem:[#allocation9 + $0xa4] ss:$16 sps:$4 sm:$0xff]   ;;  %v762_v5 = vld [vmem:[#allocation9 + $0xa0] ss:$16 sps:$4 sm:$0xff]   ;;  %v777_v8 = vld [vmem:[#allocation9 + $0xe8] ss:$16 sps:$4 sm:$0xff]   ;;  %552 = vmatprep.subr.bf16.mxu1 %v774_v7 }
  0x29   :  { %511 = vmatprep.subr.bf16.mxu0 %v757_v2  ;;  %v763_v6 = vld [vmem:[#allocation9 + $0x84] ss:$16 sps:$4 sm:$0xff]   ;;  %v765_v9 = vld [vmem:[#allocation9 + $0x80] ss:$16 sps:$4 sm:$0xff]   ;;  %553 = vmatpush1.bf16.msra.mxu1 %v777_v8  ;;  %v780_v11 = vld [vmem:[#allocation9 + $0xcc] ss:$16 sps:$4 sm:$0xff]  }
  0x2a   :  { %v766_v10 = vld [vmem:[#allocation9 + $0x64] ss:$16 sps:$4 sm:$0xff]   ;;  %v783_v12 = vld [vmem:[#allocation9 + $0xc8] ss:$16 sps:$4 sm:$0xff]   ;;  %554 = vmatprep.subr.bf16.mxu1 %v780_v11  ;;  %v768_v13 = vld [vmem:[#allocation9 + $0x60] ss:$16 sps:$4 sm:$0xff]  }
  0x2b   :  { %v769_v14 = vld [vmem:[#allocation9 + $0x44] ss:$16 sps:$4 sm:$0xff]   ;;  %v786_v15 = vld [vmem:[#allocation9 + $0xac] ss:$16 sps:$4 sm:$0xff]   ;;  %v789_v16 = vld [vmem:[#allocation9 + $0xa8] ss:$16 sps:$4 sm:$0xff]  }
  0x2c   :  { %512 = vmatpush1.bf16.msra.mxu0 %v759_v3  ;;  %v792_v17 = vld [vmem:[#allocation9 + $0x8c] ss:$16 sps:$4 sm:$0xff]   ;;  %v771_v18 = vld [vmem:[#allocation9 + $0x40] ss:$16 sps:$4 sm:$0xff]   ;;  %v772_v19 = vld [vmem:[#allocation9 + $0x24] ss:$16 sps:$4 sm:$0xff]  }
  0x2d   :  { %513 = vmatprep.subr.bf16.mxu0 %v760_v4  ;;  %555 = vmatpush1.bf16.msra.mxu1 %v783_v12  ;;  %v795_v20 = vld [vmem:[#allocation9 + $0x88] ss:$16 sps:$4 sm:$0xff]   ;;  %v798_v21 = vld [vmem:[#allocation9 + $0x6c] ss:$16 sps:$4 sm:$0xff]   ;;  %v776_v22 = vld [vmem:[#allocation9 + $0x20] ss:$16 sps:$4 sm:$0xff]  }
  0x2e   :  { %556 = vmatprep.subr.bf16.mxu1 %v786_v15  ;;  %v778_v23 = vld [vmem:[#allocation9 + $0x4] ss:$16 sps:$4 sm:$0xff]   ;;  %v801_v24 = vld [vmem:[#allocation9 + $0x68] ss:$16 sps:$4 sm:$0xff]   ;;  %v804_v25 = vld [vmem:[#allocation9 + $0x4c] ss:$16 sps:$4 sm:$0xff]  }
  0x2f   :  { %v782_v26 = vld [vmem:[#allocation9] ss:$16 sps:$4 sm:$0xff]   ;;  %v784_v27 = vld [vmem:[#allocation9 + $0x1e4] ss:$16 sps:$4 sm:$0xff]   ;;  %v807_v28 = vld [vmem:[#allocation9 + $0x48] ss:$16 sps:$4 sm:$0xff]  }
  0x30   :  { %514 = vmatpush1.bf16.msra.mxu0 %v762_v5  ;;  %v810_v29 = vld [vmem:[#allocation9 + $0x2c] ss:$16 sps:$4 sm:$0xff]   ;;  %v788_v30 = vld [vmem:[#allocation9 + $0x1e0] ss:$16 sps:$4 sm:$0xff]   ;;  %v790_v31 = vld [vmem:[#allocation9 + $0x1c4] ss:$16 sps:$4 sm:$0xff]  }
  0x31   :  { %515 = vmatprep.subr.bf16.mxu0 %v763_v6  ;;  %557 = vmatpush1.bf16.msra.mxu1 %v789_v16  ;;  %v813_v32 = vld [vmem:[#allocation9 + $0x28] ss:$16 sps:$4 sm:$0xff]   ;;  %v816_v33 = vld [vmem:[#allocation9 + $0xc] ss:$16 sps:$4 sm:$0xff]   ;;  %v1004_v34 = vld [vmem:[#allocation4] sm:$0xff]  ;;  %v159_v6 = vlaneseq }
  0x32   :  { %558 = vmatprep.subr.bf16.mxu1 %v792_v17  ;;  %v794_v35 = vld [vmem:[#allocation9 + $0x1c0] ss:$16 sps:$4 sm:$0xff]   ;;  %v796_v36 = vld [vmem:[#allocation9 + $0x1a4] ss:$16 sps:$4 sm:$0xff]   ;;  %v1006_v37 = vld [vmem:[#allocation4 + $0x8] sm:$0xff] }
  0x33   :  { %v819_v38 = vld [vmem:[#allocation9 + $0x8] ss:$16 sps:$4 sm:$0xff]   ;;  %v745_v39 = vpack.c.bf16 %v1006_v37, %v1004_v34  ;;  %v822_v40 = vld [vmem:[#allocation9 + $0x1ec] ss:$16 sps:$4 sm:$0xff]   ;;  %v800_v41 = vld [vmem:[#allocation9 + $0x1a0] ss:$16 sps:$4 sm:$0xff]  }
  0x34   :  { %516 = vmatpush1.bf16.msra.mxu0 %v765_v9  ;;  %v802_v42 = vld [vmem:[#allocation9 + $0x184] ss:$16 sps:$4 sm:$0xff]   ;;  %v825_v43 = vld [vmem:[#allocation9 + $0x1e8] ss:$16 sps:$4 sm:$0xff]   ;;  %v828_v44 = vld [vmem:[#allocation9 + $0x1cc] ss:$16 sps:$4 sm:$0xff]  }
  0x35   :  { %517 = vmatprep.subr.bf16.mxu0 %v766_v10  ;;  %559 = vmatpush1.bf16.msra.mxu1 %v795_v20  ;;  %v806_v45 = vld [vmem:[#allocation9 + $0x180] ss:$16 sps:$4 sm:$0xff]   ;;  %v808_v46 = vld [vmem:[#allocation9 + $0x164] ss:$16 sps:$4 sm:$0xff]   ;;  %v831_v47 = vld [vmem:[#allocation9 + $0x1c8] ss:$16 sps:$4 sm:$0xff]  }
  0x36   :  { %560 = vmatprep.subr.bf16.mxu1 %v798_v21  ;;  %541 = vmatprep.mubr.bf16.mxu0 %v745_v39  ;;  %v832_v48 = vld [vmem:[#allocation9 + $0x1ac] ss:$16 sps:$4 sm:$0xff]   ;;  %v812_v49 = vld [vmem:[#allocation9 + $0x160] ss:$16 sps:$4 sm:$0xff]   ;;  %v814_v50 = vld [vmem:[#allocation9 + $0x144] ss:$16 sps:$4 sm:$0xff]  }
  0x37   :  { %584 = vmatprep.mubr.bf16.mxu1 %v745_v39  ;;  %v834_v51 = vld [vmem:[#allocation9 + $0x1a8] ss:$16 sps:$4 sm:$0xff]   ;;  %v835_v52 = vld [vmem:[#allocation9 + $0x18c] ss:$16 sps:$4 sm:$0xff]   ;;  %v818_v53 = vld [vmem:[#allocation9 + $0x140] ss:$16 sps:$4 sm:$0xff]  }
  0x38   :  { %518 = vmatpush1.bf16.msra.mxu0 %v768_v13  ;;  %v820_v54 = vld [vmem:[#allocation9 + $0x124] ss:$16 sps:$4 sm:$0xff]   ;;  %v837_v55 = vld [vmem:[#allocation9 + $0x188] ss:$16 sps:$4 sm:$0xff]   ;;  %v838_v56 = vld [vmem:[#allocation9 + $0x16c] ss:$16 sps:$4 sm:$0xff]  }
  0x39   :  { %519 = vmatprep.subr.bf16.mxu0 %v769_v14  ;;  %561 = vmatpush1.bf16.msra.mxu1 %v801_v24  ;;  %v824_v57 = vld [vmem:[#allocation9 + $0x120] ss:$16 sps:$4 sm:$0xff]   ;;  %v826_v58 = vld [vmem:[#allocation9 + $0x104] ss:$16 sps:$4 sm:$0xff]   ;;  %v840_v59 = vld [vmem:[#allocation9 + $0x168] ss:$16 sps:$4 sm:$0xff]  }
  0x3a   :  { %562 = vmatprep.subr.bf16.mxu1 %v804_v25  ;;  %v841_v60 = vld [vmem:[#allocation9 + $0x14c] ss:$16 sps:$4 sm:$0xff]   ;;  %v830_v61 = vld [vmem:[#allocation9 + $0x100] ss:$16 sps:$4 sm:$0xff]   ;;  %v843_v0 = vld [vmem:[#allocation9 + $0x148] ss:$16 sps:$4 sm:$0xff]  }
  0x3b   :  { %v69_v62 = vld [vmem:[#allocation7] sm:$0xff]  ;;  %v70_v63 = vld [vmem:[#allocation7 + $0x8] sm:$0xff]  ;;  %v160_v7 = vshrl.u32 %v159_v6, 7  ;;  %v157_v9 = vld [vmem:[%s1024_s3] sm:$0xf]  ;;  %s963_s3 = smov [#allocation10]  }
  0x3c   :  { %520 = vmatpush1.bf16.msra.mxu0 %v771_v18  ;;  %v844_v1 = vld [vmem:[#allocation9 + $0x12c] ss:$16 sps:$4 sm:$0xff]   ;;  %v744_v2 = vpack.c.bf16 %v70_v63, %v69_v62  ;;  %v846_v3 = vld [vmem:[#allocation9 + $0x128] ss:$16 sps:$4 sm:$0xff]   ;;  %s642_s7 = sshll.u32 %s963_s3, 4  ;;  %s643_s7 = int_to_ptr.vmem [resolvable:$true] %s642_s7 }
  0x3d   :  { %521 = vmatprep.subr.bf16.mxu0 %v772_v19  ;;  %563 = vmatpush1.bf16.msra.mxu1 %v807_v28  ;;  %v847_v4 = vld [vmem:[#allocation9 + $0x10c] ss:$16 sps:$4 sm:$0xff]   ;;  %v849_v5 = vld [vmem:[#allocation9 + $0x108] ss:$16 sps:$4 sm:$0xff]   ;;  %v161_v8 = vsub.s32 0, %v160_v7  ;;  %v165_v11 = vsub.s32 1, %v160_v7  ;;  %p935_p2 = scmp.lt.s32.totalorder %s643_s7, %s643_s7 }
  0x3e   :  { %564 = vmatprep.subr.bf16.mxu1 %v810_v29  ;;  %s930_s8 = scalar_lea.vmem %s643_s7, 256 }
  0x3f   :  { %v162_v10 = vrot.slane %v157_v9, %v161_v8  ;;  %v166_v16 = vrot.slane %v157_v9, %v165_v11  ;;  %p931_p1 = scmp.ne.s32.totalorder %s643_s7, %s930_s8  ;;  %p936_p3 = scmp.lt.s32.totalorder %s930_s8, %s930_s8 }
  0x40   :  { %522 = vmatpush1.bf16.msra.mxu0 %v776_v22 }
  0x41   :  { %523 = vmatprep.subr.bf16.mxu0 %v778_v23  ;;  %565 = vmatpush1.bf16.msra.mxu1 %v813_v32  ;;  %v169_v32 = vsub.s32 2, %v160_v7  ;;  %p937_p4 = por %p936_p3, %p935_p2 }
  0x42   :  { %566 = vmatprep.subr.bf16.mxu1 %v816_v33 }
  0x43   :  { %p938_p5 = pnand %p937_p4, %p931_p1 }
  0x44   :  { %524 = vmatpush1.bf16.msra.mxu0 %v782_v26 }
  0x45   :  { %525 = vmatprep.subr.bf16.mxu0 %v784_v27  ;;  %567 = vmatpush1.bf16.msra.mxu1 %v819_v38 }
  0x46   :  { %568 = vmatprep.subr.bf16.mxu1 %v822_v40  ;;  %v170_v40 = vrot.slane %v157_v9, %v169_v32 }
  0x48   :  { %526 = vmatpush2.bf16.msra.mxu0 %v788_v30  ;;  %v173_v30 = vsub.s32 3, %v160_v7 }
  0x49   :  { %527 = vmatprep.subr.bf16.mxu0 %v790_v31  ;;  %569 = vmatpush2.bf16.msra.mxu1 %v825_v43 }
  0x4a   :  { %570 = vmatprep.subr.bf16.mxu1 %v828_v44 }
  0x4c   :  { %528 = vmatpush2.bf16.msra.mxu0 %v794_v35  ;;  %v174_v35 = vrot.slane %v157_v9, %v173_v30 }
  0x4d   :  { %529 = vmatprep.subr.bf16.mxu0 %v796_v36  ;;  %571 = vmatpush2.bf16.msra.mxu1 %v831_v47 }
  0x4e   :  { %572 = vmatprep.subr.bf16.mxu1 %v832_v48 }
  0x50   :  { %530 = vmatpush2.bf16.msra.mxu0 %v800_v41 }
  0x51   :  { %531 = vmatprep.subr.bf16.mxu0 %v802_v42  ;;  %573 = vmatpush2.bf16.msra.mxu1 %v834_v51 }
  0x52   :  { %574 = vmatprep.subr.bf16.mxu1 %v835_v52 }
  0x54   :  { %532 = vmatpush2.bf16.msra.mxu0 %v806_v45 }
  0x55   :  { %533 = vmatprep.subr.bf16.mxu0 %v808_v46  ;;  %575 = vmatpush2.bf16.msra.mxu1 %v837_v55 }
  0x56   :  { %576 = vmatprep.subr.bf16.mxu1 %v838_v56 }
  0x58   :  { %534 = vmatpush2.bf16.msra.mxu0 %v812_v49 }
  0x59   :  { %535 = vmatprep.subr.bf16.mxu0 %v814_v50  ;;  %577 = vmatpush2.bf16.msra.mxu1 %v840_v59 }
  0x5a   :  { %578 = vmatprep.subr.bf16.mxu1 %v841_v60 }
  0x5c   :  { %536 = vmatpush2.bf16.msra.mxu0 %v818_v53 }
  0x5d   :  { %537 = vmatprep.subr.bf16.mxu0 %v820_v54  ;;  %579 = vmatpush2.bf16.msra.mxu1 %v843_v0 }
  0x5e   :  { %580 = vmatprep.subr.bf16.mxu1 %v844_v1 }
  0x60   :  { %538 = vmatpush2.bf16.msra.mxu0 %v824_v57 }
  0x61   :  { %539 = vmatprep.subr.bf16.mxu0 %v826_v58  ;;  %581 = vmatpush2.bf16.msra.mxu1 %v846_v3 }
  0x62   :  { %582 = vmatprep.subr.bf16.mxu1 %v847_v4 }
  0x64   :  { %540 = vmatpush2.bf16.msra.mxu0 %v830_v61 }
  0x65   :  { %583 = vmatpush2.bf16.msra.mxu1 %v849_v5 }
  0x67   :  { %542 = vmatmul.mubr.bf16.vlgmr.msra.gmra.mxu0 %v744_v2 }
  0x68   :  { %585 = vmatmul.mubr.bf16.vlgmr.msra.gmra.mxu1 %v744_v2 }
 0x127   :  { %v543_v12 = vpop.f32.mrf.mxu0 }
 0x128   :  { %v544_v13 = vadd.f32 %v543_v12, %v162_v10  ;;  %v586_v28 = vpop.f32.mrf.mxu1 }
 0x129   :  { %v545_v14 = vpop.f32.mrf.mxu0  ;;  %v587_v45 = vadd.f32 %v586_v28, %v170_v40 }
 0x12a   :  { %v725_v15 = vmul.f32 -1.442695, %v544_v13  ;;  %v546_v19 = vadd.f32 %v545_v14, %v166_v16  ;;  %v588_v31 = vpop.f32.mrf.mxu1 }
 0x12b   :  { %v547_v17 = vpop.f32.mrf.mxu0  ;;  %v589_v41 = vadd.f32 %v588_v31, %v174_v35 }
 0x12c   :  { %850 = vpow2.f32 %v725_v15  ;;  %v548_v18 = vadd.f32 %v547_v17, %v162_v10  ;;  %v726_v23 = vmul.f32 -1.442695, %v546_v19  ;;  %v590_v36 = vpop.f32.mrf.mxu1 }
 0x12d   :  { %v549_v21 = vpop.f32.mrf.mxu0  ;;  %v591_v50 = vadd.f32 %v590_v36, %v170_v40 }
 0x12e   :  { %v727_v20 = vmul.f32 -1.442695, %v548_v18  ;;  %v550_v22 = vadd.f32 %v549_v21, %v166_v16  ;;  %v592_v44 = vpop.f32.mrf.mxu1 }
 0x12f   :  { %v593_v48 = vadd.f32 %v592_v44, %v174_v35 }
 0x130   :  { %852 = vpow2.f32 %v727_v20  ;;  %v728_v24 = vmul.f32 -1.442695, %v550_v22 }
 0x131   :  { %854 = vpow2.f32 %v726_v23 }
 0x132   :  { %856 = vpow2.f32 %v728_v24 }
 0x139   :  { %v851_v25 = vpop.eup %850 }
 0x13a   :  { %v607_v26 = vadd.f32 1.0, %v851_v25 }
 0x13c   :  { %858 = vrcp.f32 %v607_v26 }
 0x13d   :  { %v853_v27 = vpop.eup %852 }
 0x13e   :  { %v609_v29 = vadd.f32 1.0, %v853_v27  ;;  %v855_v33 = vpop.eup %854 }
 0x13f   :  { %v857_v38 = vpop.eup %856  ;;  %v608_v39 = vadd.f32 1.0, %v855_v33 }
 0x140   :  { %860 = vrcp.f32 %v609_v29  ;;  %v610_v43 = vadd.f32 1.0, %v857_v38 }
 0x141   :  { %862 = vrcp.f32 %v608_v39 }
 0x142   :  { %864 = vrcp.f32 %v610_v43 }
 0x149   :  { %v859_v42 = vpop.eup %858 }
 0x14a   :  { %v619_v46 = vmul.f32 %v859_v42, %v589_v41 }
 0x14c   :  { %v621_v47 = vadd.f32 %v619_v46, %v587_v45 }
 0x14d   :  { %v861_v49 = vpop.eup %860 }
 0x14e   :  { %866 = vtanh.f32 %v621_v47  ;;  %v620_v51 = vmul.f32 %v861_v49, %v593_v48  ;;  %v863_v53 = vpop.eup %862 }
 0x14f   :  { %v865_v54 = vpop.eup %864  ;;  %v625_v55 = vsub.f32 1.0, %v863_v53  ;;  %v629_v58 = vmul.f32 %v863_v53, %v1004_v34 }
 0x150   :  { %v622_v52 = vadd.f32 %v620_v51, %v591_v50  ;;  %v626_v59 = vsub.f32 1.0, %v865_v54  ;;  %v630_v63 = vmul.f32 %v865_v54, %v1006_v37 }
 0x152   :  { %868 = vtanh.f32 %v622_v52 }
 0x15b   :  { %v867_v56 = vpop.eup %866 }
 0x15c   :  { %v627_v57 = vmul.f32 %v867_v56, %v625_v55 }
 0x15e   :  { %v631_v60 = vadd.f32 %v629_v58, %v627_v57 }
 0x15f   :  { %v869_v61 = vpop.eup %868 }
 0x160   :  { %v628_v62 = vmul.f32 %v869_v61, %v626_v59  ;;  %635 = vst [vmem:[#allocation10] sm:$0xff] %v631_v60 }
 0x162   :  { %v632_v0 = vadd.f32 %v630_v63, %v628_v62 }
 0x164   :  { %636 = vst [vmem:[#allocation10 + $0x8] sm:$0xff] %v632_v0 }
 0x165   :  { %941 = shalt.err (!%p938_p5)
}
 0x166   :  { %648 = dma.vmem_to_hbm [thread:$0]  %s643_s7, 256, %s1025_s4, [#allocation6], %s958_s20, %s958_s20, %s959_s21  }
 0x167   :  { %954 = dma.done.wait [#allocation6], 256  }
 0x168   :  { %955 = vsyncadd [#allocation6], 4294967040 }
 0x169   :  { %652 = vsyncpa [#allocation5], 1 }
 0x16a   :  { %653 = vsyncpa [#allocation8], 1 }
 0x16b   :  { %654 = vsyncpa [#allocation6], 1 }

</bundles_post_ra>
